<compile_context>
chip_gen: v7x
topology: tpu7x:2x2x1
jax: 0.10.0
libtpu: 0.0.40
codegen_flags: <defaults>
</compile_context>

<pallas_src>
import functools

import jax
import jax.numpy as jnp
import numpy as np
from jax import lax
from jax.experimental import pallas as pl
from jax.experimental.pallas import tpu as pltpu

EPS = 1e-5
LANE = 128
SUBLANE = 8


def _round_up(x, m):
    return ((x + m - 1) // m) * m


def _vmem_capacity_bytes():
    try:
        return int(pltpu.get_tpu_info().vmem_capacity_bytes)
    except Exception:
        return 64 * 1024 * 1024          # conservative: v7x per-TC VMEM


def _pick_tile_and_vmem(N, F, Cout_p, op_bytes, row_tile):
    """Pick a row tile + vmem_limit from the generation's physical VMEM."""
    vmem_cap = _vmem_capacity_bytes()
    budget = int(0.45 * vmem_cap)        # headroom for compiler scratch

    def working_set(tn):
        return (2 * tn * F * op_bytes          # im2col block (double buffered)
                + 2 * F * Cout_p * op_bytes    # weight block (constant index_map)
                + 2 * tn * Cout_p * 4          # f32 conv-out block
                + 2 * SUBLANE * Cout_p * 4)    # stats block

    tn = _round_up(max(int(row_tile), 256), 256)   # prefer 256-row multiples
    while tn > 256 and working_set(tn) > budget:
        tn -= 256
    while tn > SUBLANE and working_set(tn) > budget:
        tn -= SUBLANE
    # Always leave >= 2 row tiles so both v7x TensorCores get work.
    tn = min(tn, _round_up(pl.cdiv(N, 2), SUBLANE))
    tn = max(_round_up(tn, SUBLANE), SUBLANE)
    vmem_limit = int(min(max(2 * working_set(tn), 32 * 1024 * 1024),
                         int(0.8 * vmem_cap)))
    return tn, vmem_limit


# ---------------------------------------------------------------------------
# Single Pallas pass: conv-as-matmul (operands already ReLU'd) + per-tile
# BatchNorm statistics, emitted alongside the conv output (no extra data pass).
# ---------------------------------------------------------------------------
def _conv_stats_kernel(a_ref, w_ref, y_ref, stats_ref, *, precision):
    # a_ref:     (TN, F)   im2col rows for this tile (post-ReLU), compute dtype
    # w_ref:     (F, Cp)   conv weight as a matrix (same block every step)
    # y_ref:     (TN, Cp)  f32 conv output tile
    # stats_ref: (8, Cp)   row 0 = sum(y), row 1 = sum(y*y) over this tile
    y = jnp.dot(a_ref[...], w_ref[...], precision=precision,
                preferred_element_type=jnp.float32)
    y_ref[...] = y
    s1 = jnp.sum(y, axis=0, keepdims=True)
    s2 = jnp.sum(y * y, axis=0, keepdims=True)
    # One unmasked full-tile store (rows 2..7 are zeros).
    row = lax.broadcasted_iota(jnp.int32, (SUBLANE, y.shape[1]), 0)
    stats_ref[...] = jnp.where(row == 0, s1, 0.0) + jnp.where(row == 1, s2, 0.0)


@functools.partial(
    jax.jit,
    static_argnames=("kernel_size", "stride", "padding", "eps", "row_tile",
                     "compute_dtype"))
def relu_conv_bn_forward(x_nchw, w_oihw, gamma, beta, *, kernel_size, stride,
                         padding, eps=EPS, row_tile=1024,
                         compute_dtype=jnp.bfloat16):
    K, s, p = kernel_size, stride, padding
    B, Cin, H, W = x_nchw.shape
    Cout = w_oihw.shape[0]
    Ho = (H + 2 * p - K) // s + 1
    Wo = (W + 2 * p - K) // s + 1

    op_bytes = jnp.dtype(compute_dtype).itemsize
    cin_sub = SUBLANE * (4 // op_bytes)        # sublane packing: 8 f32 / 16 bf16
    Cin_p = _round_up(Cin, cin_sub)            # aligned contraction channels
    Cout_p = _round_up(Cout, LANE)             # lane-dense output channels
    F = K * K * Cin_p                          # im2col feature width

    N = B * Ho * Wo
    TN, vmem_limit = _pick_tile_and_vmem(N, F, Cout_p, op_bytes, row_tile)
    n_tiles = pl.cdiv(N, TN)
    N_pad = n_tiles * TN

    # f32 operands -> force full-precision MXU passes (tight reference path);
    # bf16 operands are native single-pass, default precision.
    precision = (lax.Precision.HIGHEST
                 if jnp.dtype(compute_dtype) == jnp.float32 else None)

    # ---- layout plumbing (XLA only, fuses into one pass over x):
    # NCHW->NHWC, ReLU (in f32, before the cast), spatial zero-pad, channel
    # pad, cast, im2col tap gather.
    x = jnp.transpose(x_nchw, (0, 2, 3, 1)).astype(jnp.float32)
    x = jnp.maximum(x, 0.0)
    xp = jnp.pad(x, ((0, 0), (p, p), (p, p), (0, Cin_p - Cin)))
    xp = xp.astype(compute_dtype)
    taps = []
    for i in range(K):
        for j in range(K):
            t = lax.slice(
                xp, (0, i, j, 0),
                (B, i + (Ho - 1) * s + 1, j + (Wo - 1) * s + 1, Cin_p),
                (1, s, s, 1))                    # (B, Ho, Wo, Cin_p)
            taps.append(t)
    a = jnp.concatenate(taps, axis=-1).reshape(N, F)
    a = jnp.pad(a, ((0, N_pad - N), (0, 0)))     # zero rows: inert for stats

    # conv weight (Cout, Cin, K, K) -> (K*K*Cin_p, Cout_p); feature order
    # matches the gather: (i*K + j)*Cin_p + c.
    wm = jnp.transpose(w_oihw.astype(jnp.float32), (2, 3, 1, 0))
    wm = jnp.pad(wm, ((0, 0), (0, 0), (0, Cin_p - Cin), (0, Cout_p - Cout)))
    wm = wm.reshape(F, Cout_p).astype(compute_dtype)

    cparams = pltpu.CompilerParams(dimension_semantics=("parallel",),
                                   vmem_limit_bytes=vmem_limit)

    # ---- Pallas pass: ReLU'd-im2col x weight MXU matmul + per-tile stats ----
    y, stats = pl.pallas_call(
        functools.partial(_conv_stats_kernel, precision=precision),
        out_shape=(jax.ShapeDtypeStruct((N_pad, Cout_p), jnp.float32),
                   jax.ShapeDtypeStruct((n_tiles, SUBLANE, Cout_p), jnp.float32)),
        grid=(n_tiles,),
        in_specs=[pl.BlockSpec((TN, F), lambda i: (i, 0)),
                  pl.BlockSpec((F, Cout_p), lambda i: (0, 0))],
        out_specs=(pl.BlockSpec((TN, Cout_p), lambda i: (i, 0)),
                   pl.BlockSpec((None, SUBLANE, Cout_p), lambda i: (i, 0, 0))),
        compiler_params=cparams,
    )(a, wm)

    # ---- tiny cross-tile reduction + BN coefficients (training-mode batch
    #      stats, biased variance; padded rows/lanes contribute zero).
    # NOTE: E[y^2]-E[y]^2 in f32 can cancel when |mean| >> std at very large N;
    #       fine for conv+BN activations at these magnitudes.
    tot = jnp.sum(stats, axis=0)                 # (8, Cout_p)
    s1 = tot[0, :Cout]
    s2 = tot[1, :Cout]
    mean = s1 / float(N)
    var = jnp.maximum(s2 / float(N) - mean * mean, 0.0)
    inv = lax.rsqrt(var + eps)
    scale = gamma.astype(jnp.float32) * inv
    shift = beta.astype(jnp.float32) - mean * scale

    # ---- BN affine + crop + NHWC->NCHW, all fused by XLA (no 2nd Pallas pass,
    #      padded lanes are written once and never re-read).
    out = y[:N, :Cout] * scale + shift
    out = out.reshape(B, Ho, Wo, Cout)
    return jnp.transpose(out, (0, 3, 1, 2)).astype(x_nchw.dtype)


# ---------------------------------------------------------------------------
# Pure-JAX reference matching PyTorch ReLUConvBN (training-mode BatchNorm).
# ---------------------------------------------------------------------------
def reference(x, w, gamma, beta, kernel_size, stride, padding, eps=EPS):
    xr = jnp.maximum(x, 0.0)
    y = lax.conv_general_dilated(
        xr, w, (stride, stride),
        [(padding, padding), (padding, padding)],
        dimension_numbers=('NCHW', 'OIHW', 'NCHW'))
    mean = y.mean(axis=(0, 2, 3), keepdims=True)
    var = ((y - mean) ** 2).mean(axis=(0, 2, 3), keepdims=True)   # biased
    yhat = (y - mean) / jnp.sqrt(var + eps)
    return yhat * gamma.reshape(1, -1, 1, 1) + beta.reshape(1, -1, 1, 1)


if __name__ == "__main__":
    def run_case(key, B, Cin, Cout, H, W, K, s, p, compute_dtype, rtol, atol):
        k1, k2, k3, k4 = jax.random.split(key, 4)
        x = jax.random.normal(k1, (B, Cin, H, W), jnp.float32)
        fan_in = Cin * K * K
        w = (jax.random.normal(k2, (Cout, Cin, K, K), jnp.float32)
             / np.sqrt(fan_in)).astype(jnp.float32)
        gamma = 1.0 + 0.1 * jax.random.normal(k3, (Cout,), jnp.float32)
        beta = 0.1 * jax.random.normal(k4, (Cout,), jnp.float32)

        out = relu_conv_bn_forward(x, w, gamma, beta, kernel_size=K, stride=s,
                                   padding=p, compute_dtype=compute_dtype)
        out = jax.block_until_ready(out)

        ref = reference(x, w, gamma, beta, K, s, p)
        assert out.shape == ref.shape
        np.testing.assert_allclose(np.asarray(out), np.asarray(ref),
                                   rtol=rtol, atol=atol)

    key = jax.random.PRNGKey(0)
    k1, k2 = jax.random.split(key)
    # 3x3 conv, stride 1, 'same' padding: f32 operands (HIGHEST-precision MXU)
    # validate the kernel math at tight tolerance.
    run_case(k1, B=2, Cin=4, Cout=4, H=16, W=16, K=3, s=1, p=1,
             compute_dtype=jnp.float32, rtol=1e-3, atol=1e-3)
    # 1x1 conv, row-padding path (N=288 -> 2 tiles of 144); default bf16
    # operand path, tolerance widened for bf16 input rounding (~4e-3 rel).
    run_case(k2, B=2, Cin=4, Cout=8, H=12, W=12, K=1, s=1, p=0,
             compute_dtype=jnp.bfloat16, rtol=2e-2, atol=2e-2)
    print("KERNEL_OK")
</pallas_src>

<mosaic_0001>
module attributes {stable_mosaic.version = 11 : i64} {
  func.func @_conv_stats_kernel(%arg0: i32, %arg1: memref<256x72xf32, #tpu.memory_space<vmem>>, %arg2: memref<72x128xf32, #tpu.memory_space<vmem>>, %arg3: memref<256x128xf32, #tpu.memory_space<vmem>>, %arg4: memref<1x8x128xf32, #tpu.memory_space<vmem>>) attributes {dimension_semantics = [#tpu.dimension_semantics<parallel>], iteration_bounds = array<i64: 2>, scalar_prefetch = 0 : i64, scratch_operands = 0 : i64, tpu.core_type = #tpu.core_type<tc>, window_params = [{transform_indices = @transform_0, window_bounds = array<i64: 256, 72>}, {pipeline_mode = #tpu.pipeline_mode<synchronous>, transform_indices = @transform_1, window_bounds = array<i64: 72, 128>}, {transform_indices = @transform_2, window_bounds = array<i64: 256, 128>}, {transform_indices = @transform_3, window_bounds = array<i64: 1, 8, 128>}]} {
    %c0 = arith.constant 0 : index
    %c0_0 = arith.constant 0 : index
    %0 = vector.load %arg1[%c0, %c0_0] : memref<256x72xf32, #tpu.memory_space<vmem>>, vector<256x72xf32>
    %c0_1 = arith.constant 0 : index
    %c0_2 = arith.constant 0 : index
    %1 = vector.load %arg2[%c0_1, %c0_2] : memref<72x128xf32, #tpu.memory_space<vmem>>, vector<72x128xf32>
    %cst = arith.constant dense<0.000000e+00> : vector<256x128xf32>
    %2 = tpu.matmul %0, %1, %cst {dimension_numbers = #tpu.dot_dimension_numbers<[1], [0], [0], [1], [0, 0, 1, 1], [], []>, precision = #tpu.contract_precision<fp32>} : vector<256x72xf32>, vector<72x128xf32>, vector<256x128xf32> -> vector<256x128xf32>
    %c0_3 = arith.constant 0 : index
    %c0_4 = arith.constant 0 : index
    %3 = vector.load %arg3[%c0_3, %c0_4] : memref<256x128xf32, #tpu.memory_space<vmem>>, vector<256x128xf32>
    tpu.vector_store %arg3[%c0_3, %c0_4], %2 {strides = array<i32>} : memref<256x128xf32, #tpu.memory_space<vmem>>, vector<256x128xf32>,
    %cst_5 = arith.constant dense<0.000000e+00> : vector<128xf32>
    %4 = vector.multi_reduction <add>, %2, %cst_5 [0] : vector<256x128xf32> to vector<128xf32>
    %5 = vector.shape_cast %4 : vector<128xf32> to vector<1x128xf32>
    %6 = arith.mulf %2, %2 : vector<256x128xf32>
    %cst_6 = arith.constant dense<0.000000e+00> : vector<128xf32>
    %7 = vector.multi_reduction <add>, %6, %cst_6 [0] : vector<256x128xf32> to vector<128xf32>
    %8 = vector.shape_cast %7 : vector<128xf32> to vector<1x128xf32>
    %9 = tpu.iota {dimensions = array<i32: 0>} : vector<8x128xi32>
    %c0_i32 = arith.constant 0 : i32
    %10 = vector.broadcast %c0_i32 : i32 to vector<8x128xi32>
    %11 = arith.cmpi eq, %9, %10 : vector<8x128xi32>
    %cst_7 = arith.constant 0.000000e+00 : f32
    %12 = vector.shape_cast %5 : vector<1x128xf32> to vector<1x128xf32>
    %13 = vector.broadcast %12 : vector<1x128xf32> to vector<8x128xf32>
    %14 = vector.broadcast %cst_7 : f32 to vector<8x128xf32>
    %15 = arith.select %11, %13, %14 : vector<8x128xi1>, vector<8x128xf32>
    %c1_i32 = arith.constant 1 : i32
    %16 = vector.broadcast %c1_i32 : i32 to vector<8x128xi32>
    %17 = arith.cmpi eq, %9, %16 : vector<8x128xi32>
    %cst_8 = arith.constant 0.000000e+00 : f32
    %18 = vector.shape_cast %8 : vector<1x128xf32> to vector<1x128xf32>
    %19 = vector.broadcast %18 : vector<1x128xf32> to vector<8x128xf32>
    %20 = vector.broadcast %cst_8 : f32 to vector<8x128xf32>
    %21 = arith.select %17, %19, %20 : vector<8x128xi1>, vector<8x128xf32>
    %22 = arith.addf %15, %21 : vector<8x128xf32>
    %c0_9 = arith.constant 0 : index
    %c0_10 = arith.constant 0 : index
    %c0_11 = arith.constant 0 : index
    %23 = vector.load %arg4[%c0_9, %c0_10, %c0_11] : memref<1x8x128xf32, #tpu.memory_space<vmem>>, vector<1x8x128xf32>
    %24 = vector.shape_cast %23 : vector<1x8x128xf32> to vector<8x128xf32>
    %25 = vector.shape_cast %22 : vector<8x128xf32> to vector<1x8x128xf32>
    tpu.vector_store %arg4[%c0_9, %c0_10, %c0_11], %25 {strides = array<i32>} : memref<1x8x128xf32, #tpu.memory_space<vmem>>, vector<1x8x128xf32>,
    return
  }
  func.func @transform_0(%arg0: i32) -> (i32, i32) {
    %c0_i32 = arith.constant 0 : i32
    %c0_i32_0 = arith.constant 0 : i32
    return %arg0, %c0_i32 : i32, i32
  }
  func.func @transform_1(%arg0: i32) -> (i32, i32) {
    %c0_i32 = arith.constant 0 : i32
    %c0_i32_0 = arith.constant 0 : i32
    %c0_i32_1 = arith.constant 0 : i32
    return %c0_i32, %c0_i32_0 : i32, i32
  }
  func.func @transform_2(%arg0: i32) -> (i32, i32) {
    %c0_i32 = arith.constant 0 : i32
    %c0_i32_0 = arith.constant 0 : i32
    return %arg0, %c0_i32 : i32, i32
  }
  func.func @transform_3(%arg0: i32) -> (i32, i32, i32) {
    %c0_i32 = arith.constant 0 : i32
    %c0_i32_0 = arith.constant 0 : i32
    %c0_i32_1 = arith.constant 0 : i32
    return %arg0, %c0_i32, %c0_i32_0 : i32, i32, i32
  }
}

</mosaic_0001>

<bundles_post_ra>
// kernel: relu_conv_bn_forward.1
= control target key start
LH: loop header
LB: loop body
LE: loop exit
PB: predicated region body
PF: predicated region fallthrough
CT: control target
= control target key end

     0   :  { %s3385_s12 = smov 0   ;;  %s4113_s0 = inlined_call_operand.vmem [shape: f32[512,72], index: 0, kind: input, shape index: {}]   ;;  %s4114_s1 = inlined_call_operand.vmem [shape: f32[72,128], index: 1, kind: input, shape index: {}]   ;;  %s4115_s2 = inlined_call_operand.vmem [shape: f32[512,128], index: 2, kind: output, shape index: {0}]   ;;  %s4116_s3 = inlined_call_operand.vmem [shape: f32[2,8,128], index: 3, kind: output, shape index: {1}]  }
   0x1 LB: > { %s3391_s13 = sadd.s32 4294967295, %s3363_s12   ;;  %p2443_p0 = scmp.ge.s32.totalorder %s3363_s12, 1  ;;  %s3363_s12 = sphi %s3385_s12, %s14_s12  }
   0x2   : > { %p141_p1 = scmp.lt.s32.totalorder %s3363_s12, 3 }
   0x4   : > { %p142_p2 = pnand %p2443_p0, %p141_p1 }
   0x6   : > { %145 = sbr.rel (%p142_p2) target bundleno = 464 (0x1d0), region = 28 }
   0xd   : > { %v217_v0 = vld [vmem:[%s4114_s1] sm:$0xff]  ;;  %v218_v1 = vld [vmem:[%s4114_s1 + $0x8] sm:$0xff]  ;;  %v219_v2 = vld [vmem:[%s4114_s1 + $0x10] sm:$0xff]  ;;  %s2444_s20 = sshll.u32 %s3391_s13, 5  ;;  %vm226_vm0 = vcmask 588800   ;;  %p181_p4 = scmp.lt.s32.totalorder %s3391_s13, 1 }
   0xe   : > { %v324_v3 = vand.u32 4294901760, %v217_v0  ;;  %v327_v4 = vand.u32 4294901760, %v218_v1  ;;  %v220_v5 = vld [vmem:[%s4114_s1 + $0x18] sm:$0xff]  ;;  %v330_v6 = vand.u32 4294901760, %v219_v2  ;;  %v221_v7 = vld [vmem:[%s4114_s1 + $0x20] sm:$0xff]  ;;  %v222_v8 = vld [vmem:[%s4114_s1 + $0x28] sm:$0xff] }
   0xf   : > { %v333_v9 = vand.u32 4294901760, %v220_v5  ;;  %v336_v10 = vand.u32 4294901760, %v221_v7  ;;  %v339_v11 = vand.u32 4294901760, %v222_v8  ;;  %v223_v12 = vld [vmem:[%s4114_s1 + $0x30] sm:$0xff]  ;;  %v224_v13 = vld [vmem:[%s4114_s1 + $0x38] sm:$0xff]  ;;  %v3423_v14 = vld [vmem:[%s4114_s1 + $0x40] sm:$0xff] }
  0x10   : > { %v3425_v15 = vpack.c.bf16 %v327_v4, %v324_v3  ;;  %v342_v16 = vand.u32 4294901760, %v223_v12  ;;  %v345_v17 = vand.u32 4294901760, %v224_v13  ;;  %p170_p3 = scmp.lt.s32.totalorder %s2444_s20, 63  ;;  %v3429_v19 = vsub.f32 %v217_v0, %v324_v3  ;;  %s4256_s13 = smov (!%p181_p4, %s3391_s13), 1 }
  0x11   : > { %v3427_v18 = vpack.c.bf16 %v333_v9, %v330_v6  ;;  %v3431_v20 = vsub.f32 %v218_v1, %v327_v4  ;;  %v3435_v21 = vpack.c.bf16 %v339_v11, %v336_v10  ;;  %v3438_v22 = vand.u32 4294901760, %v3423_v14  ;;  %s2448_s15 = sshll.u32 %s4256_s13, 3 }
  0x12   : > { %3094 = vmatprep.subr.bf16.mxu1 %v3425_v15  ;;  %3142 = vmatprep.subr.bf16.mxu0 %v3425_v15  ;;  %s4254_s20 = smov (!%p170_p3, %s2444_s20), 63  ;;  %v3442_v23 = vsub.f32 %v219_v2, %v330_v6  ;;  %v3444_v24 = vsub.f32 %v220_v5, %v333_v9  ;;  %v3448_v25 = vpack.c.bf16 %v345_v17, %v342_v16  ;;  %v720_v26 = vand.u32 4294901760, %v3429_v19  ;;  %s184_s18 = scalar_lea.vmem %s4116_s3, %s2448_s15 }
  0x13   : > { %3096 = vmatpush3.bf16.msra.mxu1 %v3425_v15  ;;  %3144 = vmatpush3.bf16.msra.mxu0 %v3425_v15  ;;  %v727_v27 = vand.u32 4294901760, %v3431_v20  ;;  %v3452_v28 = vsub.f32 %v221_v7, %v336_v10  ;;  %s2445_s6 = sshll.u32 %s4254_s20, 3  ;;  %v3459_v31 = vsub.f32 %v222_v8, %v339_v11  ;;  %v3461_v32 = vsub.f32 %v223_v12, %v342_v16 }
  0x14   : > { %3098 = vmatprep.subr.bf16.mxu1 %v3427_v18  ;;  %3146 = vmatprep.subr.bf16.mxu0 %v3427_v18  ;;  %v734_v29 = vand.u32 4294901760, %v3442_v23  ;;  %v741_v30 = vand.u32 4294901760, %v3444_v24  ;;  %s3468_s9 = scalar_lea.vmem %s4113_s0, %s2445_s6  ;;  %v721_v33 = vsub.f32 %v3429_v19, %v720_v26  ;;  %v3474_v36 = vsub.f32 %v224_v13, %v345_v17  ;;  %s4071_s14 = scalar_lea.vmem %s4115_s2, %s2445_s6 }
  0x15   : > { %v728_v34 = vsub.f32 %v3431_v20, %v727_v27  ;;  %v3472_v35 = vpack.c.bf16 %v727_v27, %v720_v26  ;;  %v185_v37 = vld [vmem:[%s3468_s9] sm:$0xff]  ;;  %v186_v38 = vld [vmem:[%s3468_s9 + $0x8] sm:$0xff]  ;;  %v187_v39 = vld [vmem:[%s3468_s9 + $0x10] sm:$0xff]  ;;  %v748_v43 = vand.u32 4294901760, %v3452_v28 }
  0x16   : > { %v3480_v40 = vsub.f32 %v3442_v23, %v734_v29  ;;  %v3483_v41 = vsub.f32 %v3444_v24, %v741_v30  ;;  %v3485_v42 = vpack.c.bf16 %v741_v30, %v734_v29  ;;  %v228_v44 = vsel %vm226_vm0, %v185_v37, 0  ;;  %v188_v48 = vld [vmem:[%s3468_s9 + $0x18] sm:$0xff]  ;;  %v189_v49 = vld [vmem:[%s3468_s9 + $0x20] sm:$0xff]  ;;  %v190_v54 = vld [vmem:[%s3468_s9 + $0x28] sm:$0xff] }
  0x17   : > { %3100 = vmatpush3.bf16.msra.mxu1 %v3427_v18  ;;  %3148 = vmatpush3.bf16.msra.mxu0 %v3427_v18  ;;  %v231_v45 = vsel %vm226_vm0, %v186_v38, 0  ;;  %v722_v46 = vand.u32 4294901760, %v721_v33  ;;  %v729_v47 = vand.u32 4294901760, %v728_v34  ;;  %v3496_v50 = vand.u32 4294901760, %v228_v44  ;;  %v191_v55 = vld [vmem:[%s3468_s9 + $0x30] sm:$0xff]  ;;  %v192_v0 = vld [vmem:[%s3468_s9 + $0x38] sm:$0xff] }
  0x18   : > { %3102 = vmatprep.subr.bf16.mxu1 %v3435_v21  ;;  %3150 = vmatprep.subr.bf16.mxu0 %v3435_v21  ;;  %v3498_v51 = vand.u32 4294901760, %v231_v45  ;;  %v234_v52 = vsel %vm226_vm0, %v187_v39, 0  ;;  %v237_v53 = vsel %vm226_vm0, %v188_v48, 0  ;;  %v240_v59 = vsel %vm226_vm0, %v189_v49, 0 }
  0x19   : > { %v3504_v56 = vpack.c.bf16 %v729_v47, %v722_v46  ;;  %v3506_v57 = vand.u32 4294901760, %v234_v52  ;;  %v3508_v58 = vand.u32 4294901760, %v237_v53  ;;  %v3512_v60 = vsub.f32 %v228_v44, %v3496_v50  ;;  %v193_v44 = vld [vmem:[%s3468_s9 + $0x40] sm:$0xff] }
  0x1a   : > { %v3515_v61 = vsub.f32 %v231_v45, %v3498_v51  ;;  %v3517_v62 = vand.u32 4294901760, %v240_v59  ;;  %v243_v63 = vsel %vm226_vm0, %v190_v54, 0  ;;  %v246_v4 = vsel %vm226_vm0, %v191_v55, 0  ;;  %v194_v45 = vld [vmem:[%s3468_s9 + $0x48] sm:$0xff] }
  0x1b   : > { %4167 = vst [vmem:[#allocation2_spill] sm:$0xff] %v3512_v60  ;;  %3104 = vmatpush3.bf16.msra.mxu1 %v3435_v21  ;;  %3152 = vmatpush3.bf16.msra.mxu0 %v3435_v21  ;;  %v3524_v1 = vsub.f32 %v234_v52, %v3506_v57  ;;  %v3527_v2 = vsub.f32 %v237_v53, %v3508_v58  ;;  %v3529_v3 = vand.u32 4294901760, %v243_v63  ;;  %v399_v5 = vand.u32 4294901760, %v3512_v60 }
  0x1c   : > { %4168 = vst [vmem:[#allocation3_spill] sm:$0xff] %v3515_v61  ;;  %3106 = vmatprep.subr.bf16.mxu1 %v3448_v25  ;;  %3154 = vmatprep.subr.bf16.mxu0 %v3448_v25  ;;  %v409_v6 = vand.u32 4294901760, %v3515_v61  ;;  %v3537_v7 = vsub.f32 %v240_v59, %v3517_v62  ;;  %v3539_v8 = vand.u32 4294901760, %v246_v4  ;;  %v249_v12 = vsel %vm226_vm0, %v192_v0, 0  ;;  %v195_v59 = vld [vmem:[%s3468_s9 + $0x50] sm:$0xff]  ;;  %v197_v0 = vld [vmem:[%s3468_s9 + $0x60] sm:$0xff] }
  0x1d   : > { %4169 = vst [vmem:[#allocation4_spill] sm:$0xff] %v3524_v1  ;;  %4170 = vst [vmem:[#allocation5_spill] sm:$0xff] %v3527_v2  ;;  %v419_v9 = vand.u32 4294901760, %v3524_v1  ;;  %v429_v10 = vand.u32 4294901760, %v3527_v2  ;;  %v3544_v11 = vsub.f32 %v243_v63, %v3529_v3  ;;  %v400_v13 = vsub.f32 %v3512_v60, %v399_v5  ;;  %2913 = vmatprep.mubr.f32.mxu0 %v399_v5  ;;  %v196_v63 = vld [vmem:[%s3468_s9 + $0x58] sm:$0xff] }
  0x1e   : > { %4171 = vst [vmem:[#allocation6_spill] sm:$0xff] %v3537_v7  ;;  %v410_v16 = vsub.f32 %v3515_v61, %v409_v6  ;;  %v439_v17 = vand.u32 4294901760, %v3537_v7  ;;  %v3551_v26 = vsub.f32 %v246_v4, %v3539_v8  ;;  %v3560_v33 = vand.u32 4294901760, %v249_v12 }
  0x1f   : > { %4172 = vst [vmem:[#allocation7_spill] sm:$0xff] %v3544_v11  ;;  %3108 = vmatpush3.bf16.msra.mxu1 %v3448_v25  ;;  %3156 = vmatpush3.bf16.msra.mxu0 %v3448_v25  ;;  %v420_v27 = vsub.f32 %v3524_v1, %v419_v9  ;;  %v430_v29 = vsub.f32 %v3527_v2, %v429_v10  ;;  %v4120_v30 = vand.u32 4294901760, %v3544_v11  ;;  %v401_v34 = vand.u32 4294901760, %v400_v13 }
  0x20   : > { %4173 = vst [vmem:[#allocation8_spill] sm:$0xff] %v3551_v26  ;;  %2713 = vmatprep.subr.mxu1 %v3438_v22  ;;  %2911 = vmatprep.subr.mxu0 %v3438_v22  ;;  %v411_v37 = vand.u32 4294901760, %v410_v16  ;;  %v440_v38 = vsub.f32 %v3537_v7, %v439_v17  ;;  %v4119_v39 = vand.u32 4294901760, %v3551_v26  ;;  %v3576_v48 = vsub.f32 %v249_v12, %v3560_v33  ;;  %v205_v7 = vld [vmem:[%s3468_s9 + $0xa0] sm:$0xff] }
  0x21   : > { %v421_v46 = vand.u32 4294901760, %v420_v27  ;;  %v3573_v47 = vsub.f32 %v3544_v11, %v4120_v30  ;;  %v755_v49 = vand.u32 4294901760, %v3459_v31  ;;  %2715 = vmatprep.mubr.f32.mxu1 %v401_v34  ;;  %v431_v52 = vand.u32 4294901760, %v430_v29  ;;  %v198_v29 = vld [vmem:[%s3468_s9 + $0x68] sm:$0xff] }
  0x22   : > { %4174 = vst [vmem:[#allocation9_spill] sm:$0xff] %v3576_v48  ;;  %v3582_v53 = vsub.f32 %v3551_v26, %v4119_v39  ;;  %v736_v54 = vand.u32 4294901760, %v3480_v40  ;;  %v743_v55 = vand.u32 4294901760, %v3483_v41  ;;  %v441_v4 = vand.u32 4294901760, %v440_v38 }
  0x23   : > { %2714 = vmatpush3.msra.mxu1 %v3438_v22  ;;  %2912 = vmatpush3.msra.mxu0 %v3438_v22  ;;  %v4118_v5 = vand.u32 4294901760, %v3576_v48  ;;  %v252_v12 = vsel %vm226_vm0, %v193_v44, 0  ;;  %v255_v13 = vsel %vm226_vm0, %v194_v45, 0  ;;  %v451_v40 = vand.u32 4294901760, %v3573_v47 }
  0x24   : > { %2716 = vmatmul.mubr.f32.vlgmr.msra.gmra.mrb[0].mxu1 %v411_v37  ;;  %3110 = vmatprep.subr.bf16.mxu1 %v3504_v56  ;;  %v3113_v41 = vpack.c.bf16 %v743_v55, %v736_v54  ;;  %v3596_v16 = vand.u32 4294901760, %v252_v12  ;;  %v3598_v27 = vand.u32 4294901760, %v255_v13  ;;  %v461_v34 = vand.u32 4294901760, %v3582_v53 }
  0x25   : > { %2914 = vmatmul.mubr.f32.vlgmr.msra.gmra.mrb[0].mxu0 %v409_v6  ;;  %3158 = vmatprep.subr.bf16.mxu0 %v3472_v35  ;;  %v258_v38 = vsel %vm226_vm0, %v195_v59, 0  ;;  %v261_v44 = vsel %vm226_vm0, %v196_v63, 0  ;;  %v264_v37 = vsel %vm226_vm0, %v197_v0, 0  ;;  %v470_v53 = vsub.f32 %v3576_v48, %v4118_v5  ;;  %v200_v5 = vld [vmem:[%s3468_s9 + $0x78] sm:$0xff] }
  0x26   : > { %3112 = vmatpush3.bf16.msra.mxu1 %v3504_v56  ;;  %3160 = vmatpush3.bf16.msra.mxu0 %v3472_v35  ;;  %v3609_v45 = vsub.f32 %v252_v12, %v3596_v16  ;;  %v3612_v47 = vsub.f32 %v255_v13, %v3598_v27  ;;  %v3614_v6 = vand.u32 4294901760, %v258_v38  ;;  %v3616_v54 = vand.u32 4294901760, %v261_v44 }
  0x27   : > { %2718 = vmatprep.mubr.f32.mxu1 %v421_v46  ;;  %2916 = vmatprep.mubr.f32.mxu0 %v419_v9  ;;  %v3621_v55 = vand.u32 4294901760, %v264_v37  ;;  %v267_v35 = vsel %vm226_vm0, %v198_v29, 0  ;;  %v749_v56 = vsub.f32 %v3452_v28, %v748_v43  ;;  %v756_v13 = vsub.f32 %v3459_v31, %v755_v49 }
  0x28   : > { %4175 = vst [vmem:[#allocation10_spill] sm:$0xff] %v3609_v45  ;;  %4176 = vst [vmem:[#allocation11_spill] sm:$0xff] %v3612_v47  ;;  %2719 = vmatmul.mubr.f32.gmra.mrb[2].mxu1 %v431_v52  ;;  %3114 = vmatprep.subr.bf16.mxu1 %v3113_v41  ;;  %v479_v59 = vand.u32 4294901760, %v3609_v45  ;;  %v4117_v46 = vand.u32 4294901760, %v3612_v47  ;;  %v3630_v9 = vsub.f32 %v258_v38, %v3614_v6  ;;  %v3640_v52 = vand.u32 4294901760, %v267_v35 }
  0x29   : > { %v3633_v63 = vsub.f32 %v261_v44, %v3616_v54  ;;  %2917 = vmatmul.mubr.f32.gmra.mrb[2].mxu0 %v429_v10  ;;  %2721 = vmatprep.mubr.f32.mxu1 %v441_v4  ;;  %v3638_v0 = vsub.f32 %v264_v37, %v3621_v55  ;;  %v750_v12 = vand.u32 4294901760, %v749_v56  ;;  %v199_v44 = vld [vmem:[%s3468_s9 + $0x70] sm:$0xff]  ;;  %v757_v56 = vand.u32 4294901760, %v756_v13 }
  0x2a   : > { %4177 = vst [vmem:[#allocation12_spill] sm:$0xff] %v3630_v9  ;;  %2919 = vmatprep.mubr.f32.mxu0 %v439_v17  ;;  %3162 = vmatprep.subr.bf16.mxu0 %v3485_v42  ;;  %v480_v29 = vsub.f32 %v3609_v45, %v479_v59  ;;  %v490_v10 = vsub.f32 %v3612_v47, %v4117_v46  ;;  %v4121_v4 = vand.u32 4294901760, %v3630_v9  ;;  %v471_v39 = vand.u32 4294901760, %v470_v53 }
  0x2b   : > { %4178 = vst [vmem:[#allocation13_spill] sm:$0xff] %v3633_v63  ;;  %4179 = vst [vmem:[#allocation14_spill] sm:$0xff] %v3638_v0  ;;  %v4122_v38 = vand.u32 4294901760, %v3633_v63  ;;  %3116 = vmatpush3.bf16.msra.mxu1 %v3113_v41  ;;  %3164 = vmatpush3.bf16.msra.mxu0 %v3485_v42  ;;  %v4124_v37 = vand.u32 4294901760, %v3638_v0  ;;  %v3658_v17 = vsub.f32 %v267_v35, %v3640_v52  ;;  %v201_v35 = vld [vmem:[%s3468_s9 + $0x80] sm:$0xff]  ;;  %v4181_v13 = vand.u32 4294901760, %v3544_v11 }
  0x2c   : > { %v3165_v46 = vpack.c.bf16 %v755_v49, %v748_v43  ;;  %2722 = vmatmul.mubr.f32.gmra.mrb[4].mxu1 %v451_v40  ;;  %v481_v30 = vand.u32 4294901760, %v480_v29  ;;  %v500_v42 = vsub.f32 %v3630_v9, %v4121_v4  ;;  %v3117_v40 = vpack.c.bf16 %v757_v56, %v750_v12  ;;  %v202_v29 = vld [vmem:[%s3468_s9 + $0x88] sm:$0xff]  ;;  %v203_v4 = vld [vmem:[%s3468_s9 + $0x90] sm:$0xff]  ;;  %v204_v56 = vld [vmem:[%s3468_s9 + $0x98] sm:$0xff] }
  0x2d   : > { %4180 = vst [vmem:[#allocation15_spill] sm:$0xff] %v3658_v17  ;;  %v510_v41 = vsub.f32 %v3633_v63, %v4122_v38  ;;  %2920 = vmatmul.mubr.f32.gmra.mrb[4].mxu0 %v4181_v13  ;;  %2724 = vmatprep.mubr.f32.mxu1 %v461_v34  ;;  %v3677_v43 = vsub.f32 %v3638_v0, %v4124_v37  ;;  %v270_v53 = vsel %vm226_vm0, %v199_v44, 0  ;;  %v4182_v38 = vand.u32 4294901760, %v3551_v26 }
  0x2e   : > { %v491_v45 = vand.u32 4294901760, %v490_v10  ;;  %v501_v13 = vand.u32 4294901760, %v500_v42  ;;  %3166 = vmatprep.subr.bf16.mxu0 %v3165_v46  ;;  %v3685_v34 = vand.u32 4294901760, %v270_v53  ;;  %v273_v37 = vsel %vm226_vm0, %v200_v5, 0  ;;  %3118 = vmatprep.subr.bf16.mxu1 %v3117_v40 }
  0x2f   : > { %2922 = vmatprep.mubr.f32.mxu0 %v4182_v38  ;;  %v511_v11 = vand.u32 4294901760, %v510_v41  ;;  %v521_v49 = vand.u32 4294901760, %v3677_v43  ;;  %3168 = vmatpush3.bf16.msra.mxu0 %v3165_v46  ;;  %v3689_v12 = vand.u32 4294901760, %v273_v37  ;;  %v276_v44 = vsel %vm226_vm0, %v201_v35, 0 }
  0x30   : > { %2725 = vmatmul.mubr.f32.gmra.mrb[6].mxu1 %v471_v39  ;;  %v3695_v10 = vsub.f32 %v270_v53, %v3685_v34  ;;  %v3697_v38 = vand.u32 4294901760, %v276_v44  ;;  %v279_v42 = vsel %vm226_vm0, %v202_v29, 0  ;;  %v282_v5 = vsel %vm226_vm0, %v203_v4, 0 }
  0x31   : > { %v4185_v41 = vand.u32 4294901760, %v3576_v48  ;;  %2727 = vmatprep.mubr.f32.mxu1 %v481_v30  ;;  %v4186_v46 = vand.u32 4294901760, %v3658_v17  ;;  %v3707_v43 = vsub.f32 %v273_v37, %v3689_v12  ;;  %v3709_v39 = vand.u32 4294901760, %v279_v42  ;;  %3120 = vmatpush3.bf16.msra.mxu1 %v3117_v40 }
  0x32   : > { %4183 = vst [vmem:[#allocation16_spill] sm:$0xff] %v3695_v10  ;;  %4184 = vst [vmem:[#allocation17_spill] sm:$0xff] %v3697_v38  ;;  %v3711_v53 = vand.u32 4294901760, %v282_v5  ;;  %v4128_v29 = vand.u32 4294901760, %v3695_v10  ;;  %v3715_v4 = vsub.f32 %v276_v44, %v3697_v38  ;;  %v285_v30 = vsel %vm226_vm0, %v204_v56, 0 }
  0x33   : > { %2923 = vmatmul.mubr.f32.gmra.mrb[6].mxu0 %v4185_v41  ;;  %v530_v35 = vsub.f32 %v3658_v17, %v4186_v46  ;;  %4187 = vst [vmem:[#allocation18_spill] sm:$0xff] %v3707_v43  ;;  %4188 = vst [vmem:[#allocation19_spill] sm:$0xff] %v3709_v39  ;;  %v288_v41 = vsel %vm226_vm0, %v205_v7, 0  ;;  %v4133_v46 = vand.u32 4294901760, %v3707_v43  ;;  %v3721_v37 = vsub.f32 %v279_v42, %v3709_v39 }
  0x34   : > { %4189 = vst [vmem:[#allocation20_spill] sm:$0xff] %v3711_v53  ;;  %2925 = vmatprep.mubr.f32.mxu0 %v479_v59  ;;  %4190 = vst [vmem:[#allocation21_spill] sm:$0xff] %v3715_v4  ;;  %v3724_v48 = vsub.f32 %v282_v5, %v3711_v53  ;;  %v3726_v59 = vand.u32 4294901760, %v285_v30  ;;  %2728 = vmatmul.mubr.f32.gmra.mrb[8].mxu1 %v491_v45  ;;  %v540_v40 = vsub.f32 %v3695_v10, %v4128_v29  ;;  %v207_v29 = vld [vmem:[%s3468_s9 + $0xb0] sm:$0xff] }
  0x35   : > { %4191 = vst [vmem:[#allocation22_spill] sm:$0xff] %v3721_v37  ;;  %v3732_v56 = vand.u32 4294901760, %v288_v41  ;;  %v762_v7 = vand.u32 4294901760, %v3461_v32  ;;  %v4195_v42 = vand.u32 4294901760, %v3612_v47  ;;  %2730 = vmatprep.mubr.f32.mxu1 %v501_v13  ;;  %v550_v45 = vsub.f32 %v3707_v43, %v4133_v46  ;;  %v206_v47 = vld [vmem:[%s3468_s9 + $0xa8] sm:$0xff]  ;;  %v211_v53 = vld [vmem:[%s3468_s9 + $0xd0] sm:$0xff] }
  0x36   : > { %4192 = vst [vmem:[#allocation23_spill] sm:$0xff] %v3724_v48  ;;  %4193 = vst [vmem:[#allocation24_spill] sm:$0xff] %v3726_v59  ;;  %v3743_v44 = vsub.f32 %v285_v30, %v3726_v59  ;;  %v4196_v26 = vand.u32 4294901760, %v3630_v9  ;;  %v531_v13 = vand.u32 4294901760, %v530_v35  ;;  %v4197_v2 = vand.u32 4294901760, %v3715_v4  ;;  %v209_v9 = vld [vmem:[%s3468_s9 + $0xc0] sm:$0xff] }
  0x37   : > { %4194 = vst [vmem:[#allocation25_spill] sm:$0xff] %v3732_v56  ;;  %2926 = vmatmul.mubr.f32.gmra.mrb[8].mxu0 %v4195_v42  ;;  %v763_v42 = vsub.f32 %v3461_v32, %v762_v7  ;;  %v541_v46 = vand.u32 4294901760, %v540_v40  ;;  %v551_v61 = vand.u32 4294901760, %v550_v45  ;;  %v3753_v5 = vsub.f32 %v288_v41, %v3732_v56 }
  0x38   : > { %2928 = vmatprep.mubr.f32.mxu0 %v4196_v26  ;;  %v560_v1 = vsub.f32 %v3715_v4, %v4197_v2  ;;  %2731 = vmatmul.mubr.f32.gmra.mrb[10].mxu1 %v511_v11  ;;  %v769_v30 = vand.u32 4294901760, %v3474_v36  ;;  %v208_v26 = vld [vmem:[%s3468_s9 + $0xb8] sm:$0xff]  ;;  %v4198_v60 = vand.u32 4294901760, %v3633_v63  ;;  %v4199_v35 = vand.u32 4294901760, %v3721_v37 }
  0x39   : > { %2733 = vmatprep.mubr.f32.mxu1 %v521_v49  ;;  %v4200_v11 = vand.u32 4294901760, %v3724_v48  ;;  %v291_v45 = vsel %vm226_vm0, %v206_v47, 0  ;;  %v4201_v56 = vand.u32 4294901760, %v3638_v0  ;;  %v764_v59 = vand.u32 4294901760, %v763_v42 }
  0x3a   : > { %v570_v2 = vsub.f32 %v3721_v37, %v4199_v35  ;;  %v3169_v49 = vpack.c.bf16 %v769_v30, %v762_v7  ;;  %v3774_v63 = vand.u32 4294901760, %v291_v45  ;;  %v210_v35 = vld [vmem:[%s3468_s9 + $0xc8] sm:$0xff]  ;;  %v561_v39 = vand.u32 4294901760, %v560_v1 }
  0x3b   : > { %2929 = vmatmul.mubr.f32.gmra.mrb[10].mxu0 %v4198_v60  ;;  %v3767_v41 = vsub.f32 %v3724_v48, %v4200_v11  ;;  %v770_v60 = vsub.f32 %v3474_v36, %v769_v30  ;;  %v294_v11 = vsel %vm226_vm0, %v207_v29, 0  ;;  %v297_v38 = vsel %vm226_vm0, %v208_v26, 0  ;;  %v212_v30 = vld [vmem:[%s3468_s9 + $0xd8] sm:$0xff] }
  0x3c   : > { %2931 = vmatprep.mubr.f32.mxu0 %v4201_v56  ;;  %v300_v40 = vsel %vm226_vm0, %v209_v9, 0  ;;  %2734 = vmatmul.mubr.f32.gmra.mrb[12].mxu1 %v531_v13  ;;  %v3783_v42 = vsub.f32 %v291_v45, %v3774_v63  ;;  %v3785_v7 = vand.u32 4294901760, %v294_v11  ;;  %v4202_v0 = vand.u32 4294901760, %v3658_v17 }
  0x3d   : > { %v771_v56 = vand.u32 4294901760, %v770_v60  ;;  %3170 = vmatprep.subr.bf16.mxu0 %v3169_v49  ;;  %2736 = vmatprep.mubr.f32.mxu1 %v541_v46  ;;  %v3790_v1 = vand.u32 4294901760, %v297_v38  ;;  %v3792_v29 = vand.u32 4294901760, %v300_v40  ;;  %v303_v9 = vsel %vm226_vm0, %v210_v35, 0 }
  0x3e   : > { %v306_v13 = vsel %vm226_vm0, %v211_v53, 0  ;;  %v4205_v26 = vand.u32 4294901760, %v3695_v10  ;;  %v4150_v60 = vand.u32 4294901760, %v3783_v42  ;;  %3172 = vmatpush3.bf16.msra.mxu0 %v3169_v49  ;;  %v3800_v47 = vsub.f32 %v294_v11, %v3785_v7  ;;  %v213_v11 = vld [vmem:[%s3468_s9 + $0xe0] sm:$0xff]  ;;  %v214_v10 = vld [vmem:[%s3468_s9 + $0xe8] sm:$0xff] }
  0x3f   : > { %2932 = vmatmul.mubr.f32.gmra.mrb[12].mxu0 %v4202_v0  ;;  %4203 = vst [vmem:[#allocation26_spill] sm:$0xff] %v3790_v1  ;;  %4204 = vst [vmem:[#allocation27_spill] sm:$0xff] %v3792_v29  ;;  %v3121_v45 = vpack.c.bf16 %v771_v56, %v764_v59  ;;  %v3802_v0 = vand.u32 4294901760, %v303_v9  ;;  %v3805_v46 = vsub.f32 %v297_v38, %v3790_v1  ;;  %v309_v53 = vsel %vm226_vm0, %v212_v30, 0 }
  0x40   : > { %2934 = vmatprep.mubr.f32.mxu0 %v4205_v26  ;;  %v3808_v35 = vsub.f32 %v300_v40, %v3792_v29  ;;  %2737 = vmatmul.mubr.f32.gmra.mrb[14].mxu1 %v551_v61  ;;  %v571_v26 = vand.u32 4294901760, %v570_v2  ;;  %v4207_v59 = vand.u32 4294901760, %v3743_v44  ;;  %v3815_v56 = vand.u32 4294901760, %v306_v13 }
  0x41   : > { %4206 = vst [vmem:[#allocation28_spill] sm:$0xff] %v3802_v0  ;;  %3122 = vmatprep.subr.bf16.mxu1 %v3121_v45  ;;  %v4209_v38 = vand.u32 4294901760, %v3707_v43  ;;  %2739 = vmatprep.mubr.f32.mxu1 %v561_v39  ;;  %v581_v40 = vand.u32 4294901760, %v3767_v41  ;;  %v4210_v30 = vand.u32 4294901760, %v3753_v5  ;;  %v610_v2 = vsub.f32 %v3783_v42, %v4150_v60 }
  0x42   : > { %v590_v49 = vsub.f32 %v3743_v44, %v4207_v59  ;;  %4208 = vst [vmem:[#allocation29_spill] sm:$0xff] %v3815_v56  ;;  %v3828_v59 = vsub.f32 %v3423_v14, %v3438_v22  ;;  %v4211_v43 = vand.u32 4294901760, %v3715_v4  ;;  %3124 = vmatpush3.bf16.msra.mxu1 %v3121_v45  ;;  %v3834_v39 = vsub.f32 %v303_v9, %v3802_v0  ;;  %v215_v4 = vld [vmem:[%s3468_s9 + $0xf0] sm:$0xff] }
  0x43   : > { %2935 = vmatmul.mubr.f32.gmra.mrb[14].mxu0 %v4209_v38  ;;  %v600_v61 = vsub.f32 %v3753_v5, %v4210_v30  ;;  %v3836_v41 = vand.u32 4294901760, %v309_v53  ;;  %v629_v38 = vand.u32 4294901760, %v3805_v46  ;;  %v4213_v17 = vand.u32 4294901760, %v3800_v47 }
  0x44   : > { %2937 = vmatprep.mubr.f32.mxu0 %v4211_v43  ;;  %v776_v60 = vand.u32 4294901760, %v3828_v59  ;;  %2740 = vmatmul.mubr.f32.gmra.mrb[16].mxu1 %v571_v26  ;;  %v591_v14 = vand.u32 4294901760, %v590_v49  ;;  %v3846_v45 = vsub.f32 %v306_v13, %v3815_v56  ;;  %v312_v9 = vsel %vm226_vm0, %v213_v11, 0 }
  0x45   : > { %4212 = vst [vmem:[#allocation30_spill] sm:$0xff] %v3836_v41  ;;  %v620_v43 = vsub.f32 %v3800_v47, %v4213_v17  ;;  %v4214_v0 = vand.u32 4294901760, %v3721_v37  ;;  %2742 = vmatprep.mubr.f32.mxu1 %v581_v40  ;;  %v601_v30 = vand.u32 4294901760, %v600_v61  ;;  %v611_v29 = vand.u32 4294901760, %v610_v2  ;;  %v216_v37 = vld [vmem:[%s3468_s9 + $0xf8] sm:$0xff] }
  0x46   : > { %v777_v26 = vsub.f32 %v3828_v59, %v776_v60  ;;  %v4215_v49 = vand.u32 4294901760, %v3724_v48  ;;  %v649_v1 = vand.u32 4294901760, %v3834_v39  ;;  %v3857_v17 = vsub.f32 %v309_v53, %v3836_v41  ;;  %2977 = vmatprep.subr.mxu0 %v776_v60 }
  0x47   : > { %2938 = vmatmul.mubr.f32.gmra.mrb[16].mxu0 %v4214_v0  ;;  %v3859_v13 = vand.u32 4294901760, %v312_v9  ;;  %v315_v11 = vsel %vm226_vm0, %v214_v10, 0  ;;  %v630_v0 = vsub.f32 %v3805_v46, %v629_v38  ;;  %v4216_v40 = vand.u32 4294901760, %v3808_v35 }
  0x48   : > { %2940 = vmatprep.mubr.f32.mxu0 %v4215_v49  ;;  %v778_v2 = vand.u32 4294901760, %v777_v26  ;;  %2978 = vmatpush3.msra.mxu0 %v776_v60  ;;  %v318_v49 = vsel %vm226_vm0, %v215_v4, 0  ;;  %v621_v48 = vand.u32 4294901760, %v620_v43  ;;  %v659_v53 = vand.u32 4294901760, %v3846_v45 }
  0x49   : > { %v640_v61 = vsub.f32 %v3808_v35, %v4216_v40  ;;  %2743 = vmatmul.mubr.f32.gmra.mrb[18].mxu1 %v591_v14  ;;  %v3870_v41 = vsub.f32 %v312_v9, %v3859_v13  ;;  %v3872_v56 = vand.u32 4294901760, %v315_v11  ;;  %3174 = vmatprep.subr.bf16.mxu0 %v3425_v15  ;;  %v4218_v10 = vand.u32 4294901760, %v3743_v44 }
  0x4a   : > { %2745 = vmatprep.mubr.f32.mxu1 %v601_v30  ;;  %v3877_v40 = vand.u32 4294901760, %v318_v49  ;;  %v321_v60 = vsel %vm226_vm0, %v216_v37, 0  ;;  %v3125_v4 = vpack.c.bf16 %v3431_v20, %v3429_v19  ;;  %v3884_v14 = vpack.c.bf16 %v3444_v24, %v3442_v23  ;;  %2779 = vmatprep.subr.mxu1 %v778_v2 }
  0x4b   : > { %4217 = vst [vmem:[#allocation31_spill] sm:$0xff] %v3870_v41  ;;  %2941 = vmatmul.mubr.f32.gmra.mrb[18].mxu0 %v4218_v10  ;;  %v4219_v43 = vand.u32 4294901760, %v3753_v5  ;;  %v3890_v9 = vpack.c.bf16 %v3459_v31, %v3452_v28  ;;  %v650_v30 = vsub.f32 %v3834_v39, %v649_v1  ;;  %2780 = vmatpush3.msra.mxu1 %v778_v2  ;;  %v631_v37 = vand.u32 4294901760, %v630_v0 }
  0x4c   : > { %v669_v26 = vand.u32 4294901760, %v3857_v17  ;;  %v3895_v19 = vsub.f32 %v315_v11, %v3872_v56  ;;  %v3897_v20 = vand.u32 4294901760, %v321_v60  ;;  %3126 = vmatprep.subr.bf16.mxu1 %v3125_v4  ;;  %v4220_v23 = vand.u32 4294901760, %v3783_v42 }
  0x4d   : > { %2943 = vmatprep.mubr.f32.mxu0 %v4219_v43  ;;  %2746 = vmatmul.mubr.f32.gmra.mrb[20].mxu1 %v611_v29  ;;  %v641_v24 = vand.u32 4294901760, %v640_v61  ;;  %v660_v28 = vsub.f32 %v3846_v45, %v659_v53  ;;  %v679_v31 = vand.u32 4294901760, %v3870_v41  ;;  %v3904_v29 = vsub.f32 %v318_v49, %v3877_v40 }
  0x4e   : > { %2748 = vmatprep.mubr.f32.mxu1 %v621_v48  ;;  %v4221_v0 = vand.u32 4294901760, %v3800_v47  ;;  %v651_v11 = vand.u32 4294901760, %v650_v30  ;;  %v670_v2 = vsub.f32 %v3857_v17, %v669_v26  ;;  %v689_v10 = vand.u32 4294901760, %v3895_v19 }
  0x4f   : > { %2944 = vmatmul.mubr.f32.gmra.mrb[20].mxu0 %v4220_v23  ;;  %v3911_v43 = vsub.f32 %v321_v60, %v3897_v20  ;;  %v661_v48 = vand.u32 4294901760, %v660_v28  ;;  %v680_v61 = vsub.f32 %v3870_v41, %v679_v31  ;;  %v699_v49 = vand.u32 4294901760, %v3904_v29 }
  0x50   : > { %2946 = vmatprep.mubr.f32.mxu0 %v4221_v0  ;;  %v4222_v23 = vand.u32 4294901760, %v3808_v35  ;;  %v690_v30 = vsub.f32 %v3895_v19, %v689_v10 }
  0x51   : > { %2749 = vmatmul.mubr.f32.gmra.mrb[22].mxu1 %v631_v37  ;;  %v671_v37 = vand.u32 4294901760, %v670_v2  ;;  %v709_v0 = vand.u32 4294901760, %v3911_v43  ;;  %v681_v60 = vand.u32 4294901760, %v680_v61  ;;  %v4238_v2 = vld [vmem:[#allocation7_spill] sm:$0xff] }
  0x52   : > { %2751 = vmatprep.mubr.f32.mxu1 %v641_v24  ;;  %v691_v24 = vand.u32 4294901760, %v690_v30 }
  0x53   : > { %2947 = vmatmul.mubr.f32.gmra.mrb[22].mxu0 %v629_v38  ;;  %v700_v38 = vsub.f32 %v3904_v29, %v699_v49  ;;  %v710_v28 = vsub.f32 %v3911_v43, %v709_v0 }
  0x54   : > { %2949 = vmatprep.mubr.f32.mxu0 %v4222_v23 }
  0x55   : > { %2752 = vmatmul.mubr.f32.gmra.mrb[24].mxu1 %v651_v11  ;;  %v701_v41 = vand.u32 4294901760, %v700_v38  ;;  %v711_v11 = vand.u32 4294901760, %v710_v28 }
  0x56   : > { %2754 = vmatprep.mubr.f32.mxu1 %v661_v48 }
  0x57   : > { %2950 = vmatmul.mubr.f32.gmra.mrb[24].mxu0 %v649_v1  ;;  %v4229_v1 = vld [vmem:[#allocation27_spill] sm:$0xff] }
  0x58   : > { %2952 = vmatprep.mubr.f32.mxu0 %v659_v53  ;;  %v4232_v53 = vld [vmem:[#allocation30_spill] sm:$0xff] }
  0x59   : > { %2755 = vmatmul.mubr.f32.gmra.mrb[26].mxu1 %v671_v37 }
  0x5a   : > { %2757 = vmatprep.mubr.f32.mxu1 %v681_v60 }
  0x5b   : > { %2953 = vmatmul.mubr.f32.gmra.mrb[26].mxu0 %v669_v26  ;;  %v4236_v26 = vld [vmem:[#allocation5_spill] sm:$0xff] }
  0x5c   : > { %2955 = vmatprep.mubr.f32.mxu0 %v679_v31  ;;  %v4237_v31 = vld [vmem:[#allocation6_spill] sm:$0xff] }
  0x5d   : > { %2758 = vmatmul.mubr.f32.gmra.mrb[28].mxu1 %v691_v24 }
  0x5e   : > { %2760 = vmatprep.mubr.f32.mxu1 %v701_v41  ;;  %v4231_v41 = vld [vmem:[#allocation29_spill] sm:$0xff] }
  0x5f   : > { %2956 = vmatmul.mubr.f32.gmra.mrb[28].mxu0 %v689_v10 }
  0x60   : > { %2958 = vmatprep.mubr.f32.mxu0 %v699_v49 }
  0x61   : > { %2761 = vmatmul.mubr.f32.gmra.mrb[30].mxu1 %v711_v11 }
  0x62   : > { %2781 = vmatprep.mubr.f32.mxu1 %v3496_v50 }
  0x63   : > { %2959 = vmatmul.mubr.f32.gmra.mrb[30].mxu0 %v709_v0 }
  0x64   : > { %2979 = vmatprep.mubr.f32.mxu0 %v3496_v50 }
  0x65   : > { %2782 = vmatmul.mubr.f32.vlgmr.msra.gmra.mrb[0].mxu1 %v3498_v51 }
  0x66   : > { %3128 = vmatpush3.bf16.msra.mxu1 %v3125_v4  ;;  %2784 = vmatprep.mubr.f32.mxu1 %v3506_v57  ;;  %v4233_v4 = vld [vmem:[#allocation2_spill] sm:$0xff] }
  0x67   : > { %2980 = vmatmul.mubr.f32.vlgmr.msra.gmra.mrb[0].mxu0 %v3498_v51  ;;  %3130 = vmatprep.subr.bf16.mxu1 %v3884_v14 }
  0x68   : > { %3176 = vmatpush3.bf16.msra.mxu0 %v3425_v15  ;;  %2982 = vmatprep.mubr.f32.mxu0 %v3506_v57  ;;  %v3137_v15 = vpack.c.bf16 %v3474_v36, %v3461_v32  ;;  %v4227_v32 = vld [vmem:[#allocation25_spill] sm:$0xff]  ;;  %v4228_v36 = vld [vmem:[#allocation26_spill] sm:$0xff] }
  0x69   : > { %2785 = vmatmul.mubr.f32.gmra.mrb[2].mxu1 %v3508_v58  ;;  %3178 = vmatprep.subr.bf16.mxu0 %v3427_v18 }
  0x6a   : > { %2787 = vmatprep.mubr.f32.mxu1 %v3517_v62  ;;  %3132 = vmatpush3.bf16.msra.mxu1 %v3884_v14  ;;  %v4234_v14 = vld [vmem:[#allocation3_spill] sm:$0xff] }
  0x6b   : > { %2983 = vmatmul.mubr.f32.gmra.mrb[2].mxu0 %v3508_v58  ;;  %3134 = vmatprep.subr.bf16.mxu1 %v3890_v9 }
  0x6c   : > { %2985 = vmatprep.mubr.f32.mxu0 %v3517_v62  ;;  %3180 = vmatpush3.bf16.msra.mxu0 %v3427_v18  ;;  %v4223_v18 = vld [vmem:[#allocation17_spill] sm:$0xff] }
  0x6d   : > { %2788 = vmatmul.mubr.f32.gmra.mrb[4].mxu1 %v3529_v3  ;;  %3182 = vmatprep.subr.bf16.mxu0 %v3435_v21 }
  0x6e   : > { %2790 = vmatprep.mubr.f32.mxu1 %v3539_v8  ;;  %3136 = vmatpush3.bf16.msra.mxu1 %v3890_v9  ;;  %v4235_v9 = vld [vmem:[#allocation4_spill] sm:$0xff] }
  0x6f   : > { %2986 = vmatmul.mubr.f32.gmra.mrb[4].mxu0 %v3529_v3  ;;  %3138 = vmatprep.subr.bf16.mxu1 %v3137_v15 }
  0x70   : > { %2988 = vmatprep.mubr.f32.mxu0 %v3539_v8  ;;  %3184 = vmatpush3.bf16.msra.mxu0 %v3435_v21  ;;  %v4224_v21 = vld [vmem:[#allocation19_spill] sm:$0xff] }
  0x71   : > { %2791 = vmatmul.mubr.f32.gmra.mrb[6].mxu1 %v3560_v33  ;;  %3186 = vmatprep.subr.bf16.mxu0 %v3448_v25 }
  0x72   : > { %2793 = vmatprep.mubr.f32.mxu1 %v3596_v16  ;;  %3140 = vmatpush3.bf16.msra.mxu1 %v3137_v15 }
  0x73   : > { %2989 = vmatmul.mubr.f32.gmra.mrb[6].mxu0 %v3560_v33  ;;  %2845 = vmatprep.subr.mxu1 %v3828_v59 }
  0x74   : > { %2991 = vmatprep.mubr.f32.mxu0 %v3596_v16  ;;  %3188 = vmatpush3.bf16.msra.mxu0 %v3448_v25  ;;  %v4226_v25 = vld [vmem:[#allocation24_spill] sm:$0xff] }
  0x75   : > { %2794 = vmatmul.mubr.f32.gmra.mrb[8].mxu1 %v3598_v27  ;;  %3043 = vmatprep.subr.mxu0 %v3438_v22 }
  0x76   : > { %2796 = vmatprep.mubr.f32.mxu1 %v3614_v6  ;;  %2846 = vmatpush3.msra.mxu1 %v3828_v59  ;;  %v4230_v59 = vld [vmem:[#allocation28_spill] sm:$0xff] }
  0x77   : > { %2992 = vmatmul.mubr.f32.gmra.mrb[8].mxu0 %v3598_v27 }
  0x78   : > { %2994 = vmatprep.mubr.f32.mxu0 %v3614_v6  ;;  %3044 = vmatpush3.msra.mxu0 %v3438_v22  ;;  %v4225_v22 = vld [vmem:[#allocation20_spill] sm:$0xff] }
  0x79   : > { %2797 = vmatmul.mubr.f32.gmra.mrb[10].mxu1 %v3616_v54 }
  0x7a   : > { %2799 = vmatprep.mubr.f32.mxu1 %v3621_v55 }
  0x7b   : > { %2995 = vmatmul.mubr.f32.gmra.mrb[10].mxu0 %v3616_v54 }
  0x7c   : > { %2997 = vmatprep.mubr.f32.mxu0 %v3621_v55 }
  0x7d   : > { %2800 = vmatmul.mubr.f32.gmra.mrb[12].mxu1 %v3640_v52 }
  0x7e   : > { %2802 = vmatprep.mubr.f32.mxu1 %v3685_v34 }
  0x7f   : > { %2998 = vmatmul.mubr.f32.gmra.mrb[12].mxu0 %v3640_v52 }
  0x80   : > { %3000 = vmatprep.mubr.f32.mxu0 %v3685_v34 }
  0x81   : > { %2803 = vmatmul.mubr.f32.gmra.mrb[14].mxu1 %v3689_v12 }
  0x82   : > { %2805 = vmatprep.mubr.f32.mxu1 %v4223_v18 }
  0x83   : > { %3001 = vmatmul.mubr.f32.gmra.mrb[14].mxu0 %v3689_v12 }
  0x84   : > { %3003 = vmatprep.mubr.f32.mxu0 %v4223_v18 }
  0x85   : > { %2806 = vmatmul.mubr.f32.gmra.mrb[16].mxu1 %v4224_v21 }
  0x86   : > { %2808 = vmatprep.mubr.f32.mxu1 %v4225_v22 }
  0x87   : > { %3004 = vmatmul.mubr.f32.gmra.mrb[16].mxu0 %v4224_v21 }
  0x88   : > { %3006 = vmatprep.mubr.f32.mxu0 %v4225_v22 }
  0x89   : > { %2809 = vmatmul.mubr.f32.gmra.mrb[18].mxu1 %v4226_v25 }
  0x8a   : > { %2811 = vmatprep.mubr.f32.mxu1 %v4227_v32 }
  0x8b   : > { %3007 = vmatmul.mubr.f32.gmra.mrb[18].mxu0 %v4226_v25 }
  0x8c   : > { %3009 = vmatprep.mubr.f32.mxu0 %v4227_v32 }
  0x8d   : > { %2812 = vmatmul.mubr.f32.gmra.mrb[20].mxu1 %v3774_v63 }
  0x8e   : > { %2814 = vmatprep.mubr.f32.mxu1 %v3785_v7 }
  0x8f   : > { %3010 = vmatmul.mubr.f32.gmra.mrb[20].mxu0 %v3774_v63 }
  0x90   : > { %3012 = vmatprep.mubr.f32.mxu0 %v3785_v7 }
  0x91   : > { %2815 = vmatmul.mubr.f32.gmra.mrb[22].mxu1 %v4228_v36 }
  0x92   : > { %2817 = vmatprep.mubr.f32.mxu1 %v4229_v1 }
  0x93   : > { %3013 = vmatmul.mubr.f32.gmra.mrb[22].mxu0 %v4228_v36 }
  0x94   : > { %3015 = vmatprep.mubr.f32.mxu0 %v4229_v1 }
  0x95   : > { %2818 = vmatmul.mubr.f32.gmra.mrb[24].mxu1 %v4230_v59 }
  0x96   : > { %2820 = vmatprep.mubr.f32.mxu1 %v4231_v41 }
  0x97   : > { %3016 = vmatmul.mubr.f32.gmra.mrb[24].mxu0 %v4230_v59 }
  0x98   : > { %3018 = vmatprep.mubr.f32.mxu0 %v4231_v41 }
  0x99   : > { %2821 = vmatmul.mubr.f32.gmra.mrb[26].mxu1 %v4232_v53 }
  0x9a   : > { %2823 = vmatprep.mubr.f32.mxu1 %v3859_v13 }
  0x9b   : > { %3019 = vmatmul.mubr.f32.gmra.mrb[26].mxu0 %v4232_v53 }
  0x9c   : > { %3021 = vmatprep.mubr.f32.mxu0 %v3859_v13 }
  0x9d   : > { %2824 = vmatmul.mubr.f32.gmra.mrb[28].mxu1 %v3872_v56 }
  0x9e   : > { %2826 = vmatprep.mubr.f32.mxu1 %v3877_v40 }
  0x9f   : > { %3022 = vmatmul.mubr.f32.gmra.mrb[28].mxu0 %v3872_v56 }
  0xa0   : > { %3024 = vmatprep.mubr.f32.mxu0 %v3877_v40 }
  0xa1   : > { %2827 = vmatmul.mubr.f32.gmra.mrb[30].mxu1 %v3897_v20 }
  0xa2   : > { %2847 = vmatprep.mubr.f32.mxu1 %v4233_v4 }
  0xa3   : > { %3025 = vmatmul.mubr.f32.gmra.mrb[30].mxu0 %v3897_v20 }
  0xa4   : > { %3045 = vmatprep.mubr.f32.mxu0 %v3496_v50  ;;  %v4239_v50 = vld [vmem:[#allocation8_spill] sm:$0xff] }
  0xa5   : > { %2848 = vmatmul.mubr.f32.vlgmr.msra.gmra.mrb[0].mxu1 %v4234_v14 }
  0xa6   : > { %2850 = vmatprep.mubr.f32.mxu1 %v4235_v9 }
  0xa7   : > { %3046 = vmatmul.mubr.f32.vlgmr.msra.gmra.mrb[0].mxu0 %v3498_v51  ;;  %v4240_v51 = vld [vmem:[#allocation9_spill] sm:$0xff] }
  0xa8   : > { %3048 = vmatprep.mubr.f32.mxu0 %v3506_v57  ;;  %v4241_v57 = vld [vmem:[#allocation10_spill] sm:$0xff] }
  0xa9   : > { %2851 = vmatmul.mubr.f32.gmra.mrb[2].mxu1 %v4236_v26 }
  0xaa   : > { %2853 = vmatprep.mubr.f32.mxu1 %v4237_v31 }
  0xab   : > { %3049 = vmatmul.mubr.f32.gmra.mrb[2].mxu0 %v3508_v58  ;;  %v4242_v58 = vld [vmem:[#allocation11_spill] sm:$0xff] }
  0xac   : > { %3051 = vmatprep.mubr.f32.mxu0 %v3517_v62  ;;  %v4243_v62 = vld [vmem:[#allocation12_spill] sm:$0xff] }
  0xad   : > { %2854 = vmatmul.mubr.f32.gmra.mrb[4].mxu1 %v4238_v2 }
  0xae   : > { %2856 = vmatprep.mubr.f32.mxu1 %v4239_v50 }
  0xaf   : > { %3052 = vmatmul.mubr.f32.gmra.mrb[4].mxu0 %v3529_v3  ;;  %v4244_v3 = vld [vmem:[#allocation13_spill] sm:$0xff] }
  0xb0   : > { %3054 = vmatprep.mubr.f32.mxu0 %v3539_v8  ;;  %v4245_v8 = vld [vmem:[#allocation14_spill] sm:$0xff] }
  0xb1   : > { %2857 = vmatmul.mubr.f32.gmra.mrb[6].mxu1 %v4240_v51 }
  0xb2   : > { %2859 = vmatprep.mubr.f32.mxu1 %v4241_v57 }
  0xb3   : > { %3055 = vmatmul.mubr.f32.gmra.mrb[6].mxu0 %v3560_v33  ;;  %v4246_v33 = vld [vmem:[#allocation15_spill] sm:$0xff] }
  0xb4   : > { %3057 = vmatprep.mubr.f32.mxu0 %v3596_v16  ;;  %v4247_v16 = vld [vmem:[#allocation16_spill] sm:$0xff] }
  0xb5   : > { %2860 = vmatmul.mubr.f32.gmra.mrb[8].mxu1 %v4242_v58 }
  0xb6   : > { %2862 = vmatprep.mubr.f32.mxu1 %v4243_v62 }
  0xb7   : > { %3058 = vmatmul.mubr.f32.gmra.mrb[8].mxu0 %v3598_v27  ;;  %v4248_v27 = vld [vmem:[#allocation18_spill] sm:$0xff] }
  0xb8   : > { %3060 = vmatprep.mubr.f32.mxu0 %v3614_v6  ;;  %v4249_v6 = vld [vmem:[#allocation21_spill] sm:$0xff] }
  0xb9   : > { %2863 = vmatmul.mubr.f32.gmra.mrb[10].mxu1 %v4244_v3 }
  0xba   : > { %2865 = vmatprep.mubr.f32.mxu1 %v4245_v8 }
  0xbb   : > { %3061 = vmatmul.mubr.f32.gmra.mrb[10].mxu0 %v3616_v54  ;;  %v4250_v54 = vld [vmem:[#allocation22_spill] sm:$0xff] }
  0xbc   : > { %3063 = vmatprep.mubr.f32.mxu0 %v3621_v55  ;;  %v4251_v55 = vld [vmem:[#allocation23_spill] sm:$0xff] }
  0xbd   : > { %2866 = vmatmul.mubr.f32.gmra.mrb[12].mxu1 %v4246_v33 }
  0xbe   : > { %2868 = vmatprep.mubr.f32.mxu1 %v4247_v16 }
  0xbf   : > { %3064 = vmatmul.mubr.f32.gmra.mrb[12].mxu0 %v3640_v52 }
  0xc0   : > { %3066 = vmatprep.mubr.f32.mxu0 %v3685_v34 }
  0xc1   : > { %2869 = vmatmul.mubr.f32.gmra.mrb[14].mxu1 %v4248_v27 }
  0xc2   : > { %2871 = vmatprep.mubr.f32.mxu1 %v4249_v6 }
  0xc3   : > { %3067 = vmatmul.mubr.f32.gmra.mrb[14].mxu0 %v3689_v12 }
  0xc4   : > { %3069 = vmatprep.mubr.f32.mxu0 %v4223_v18 }
  0xc5   : > { %2872 = vmatmul.mubr.f32.gmra.mrb[16].mxu1 %v4250_v54 }
  0xc6   : > { %2874 = vmatprep.mubr.f32.mxu1 %v4251_v55 }
  0xc7   : > { %3070 = vmatmul.mubr.f32.gmra.mrb[16].mxu0 %v4224_v21 }
  0xc8   : > { %3072 = vmatprep.mubr.f32.mxu0 %v4225_v22 }
  0xc9   : > { %2875 = vmatmul.mubr.f32.gmra.mrb[18].mxu1 %v3743_v44 }
  0xca   : > { %2877 = vmatprep.mubr.f32.mxu1 %v3753_v5 }
  0xcb   : > { %3073 = vmatmul.mubr.f32.gmra.mrb[18].mxu0 %v4226_v25 }
  0xcc   : > { %3075 = vmatprep.mubr.f32.mxu0 %v4227_v32 }
  0xcd   : > { %2878 = vmatmul.mubr.f32.gmra.mrb[20].mxu1 %v3783_v42 }
  0xce   : > { %2880 = vmatprep.mubr.f32.mxu1 %v3800_v47 }
  0xcf   : > { %3076 = vmatmul.mubr.f32.gmra.mrb[20].mxu0 %v3774_v63  ;;  %v4252_v63 = vld [vmem:[#allocation31_spill] sm:$0xff] }
  0xd0   : > { %3078 = vmatprep.mubr.f32.mxu0 %v3785_v7 }
  0xd1   : > { %2881 = vmatmul.mubr.f32.gmra.mrb[22].mxu1 %v3805_v46 }
  0xd2   : > { %2883 = vmatprep.mubr.f32.mxu1 %v3808_v35 }
  0xd3   : > { %3079 = vmatmul.mubr.f32.gmra.mrb[22].mxu0 %v4228_v36 }
  0xd4   : > { %3081 = vmatprep.mubr.f32.mxu0 %v4229_v1 }
  0xd5   : > { %2884 = vmatmul.mubr.f32.gmra.mrb[24].mxu1 %v3834_v39 }
  0xd6   : > { %2886 = vmatprep.mubr.f32.mxu1 %v3846_v45 }
  0xd7   : > { %3082 = vmatmul.mubr.f32.gmra.mrb[24].mxu0 %v4230_v59 }
  0xd8   : > { %3084 = vmatprep.mubr.f32.mxu0 %v4231_v41 }
  0xd9   : > { %2887 = vmatmul.mubr.f32.gmra.mrb[26].mxu1 %v3857_v17 }
  0xda   : > { %2889 = vmatprep.mubr.f32.mxu1 %v4252_v63 }
  0xdb   : > { %3085 = vmatmul.mubr.f32.gmra.mrb[26].mxu0 %v4232_v53 }
  0xdc   : > { %3087 = vmatprep.mubr.f32.mxu0 %v3859_v13 }
  0xdd   : > { %2890 = vmatmul.mubr.f32.gmra.mrb[28].mxu1 %v3895_v19 }
  0xde   : > { %2892 = vmatprep.mubr.f32.mxu1 %v3904_v29 }
  0xdf   : > { %3088 = vmatmul.mubr.f32.gmra.mrb[28].mxu0 %v3872_v56 }
  0xe0   : > { %3090 = vmatprep.mubr.f32.mxu0 %v3877_v40 }
  0xe1   : > { %2893 = vmatmul.mubr.f32.gmra.mrb[30].mxu1 %v3911_v43 }
  0xe3   : > { %3091 = vmatmul.mubr.f32.gmra.mrb[30].mxu0 %v3897_v20 }
 0x178   : > { %v2849_v52 = vpop.f32.mrb[0].mxu1 }
 0x179   : > { %v1105_v12 = vpop.f32.mrb[1].mxu1 }
 0x17a   : > { %v3047_v34 = vpop.f32.mrb[0].mxu0 }
 0x17b   : > { %v3189_v44 = vadd.f32 %v3047_v34, %v2849_v52  ;;  %v2016_v5 = vpop.f32.mrb[1].mxu0 }
 0x17c   : > { %v3190_v47 = vadd.f32 %v2016_v5, %v1105_v12  ;;  %v2852_v7 = vpop.f32.mrb[2].mxu1 }
 0x17d   : > { %2207 = vst [vmem:[%s4071_s14 + $0x8] sm:$0xff] %v3189_v44  ;;  %v2276_v42 = vmul.f32 %v3189_v44, %v3189_v44  ;;  %v1119_v39 = vpop.f32.mrb[3].mxu1 }
 0x17e   : > { %2206 = vst [vmem:[%s4071_s14] sm:$0xff] %v3190_v47  ;;  %v2238_v46 = vadd.f32 %v3190_v47, %v3189_v44  ;;  %v2275_v35 = vmul.f32 %v3190_v47, %v3190_v47  ;;  %v3050_v56 = vpop.f32.mrb[2].mxu0 }
 0x17f   : > { %v3191_v45 = vadd.f32 %v3050_v56, %v2852_v7  ;;  %v2028_v17 = vpop.f32.mrb[3].mxu0 }
 0x180   : > { %v2307_v13 = vadd.f32 %v2276_v42, %v2275_v35  ;;  %v3192_v40 = vadd.f32 %v2028_v17, %v1119_v39  ;;  %v2855_v19 = vpop.f32.mrb[4].mxu1 }
 0x181   : > { %2209 = vst [vmem:[%s4071_s14 + $0x18] sm:$0xff] %v3191_v45  ;;  %v1133_v43 = vpop.f32.mrb[5].mxu1  ;;  %v2278_v49 = vmul.f32 %v3191_v45, %v3191_v45 }
 0x182   : > { %2208 = vst [vmem:[%s4071_s14 + $0x10] sm:$0xff] %v3192_v40  ;;  %v2239_v20 = vadd.f32 %v3192_v40, %v2238_v46  ;;  %v2277_v29 = vmul.f32 %v3192_v40, %v3192_v40  ;;  %v3053_v10 = vpop.f32.mrb[4].mxu0 }
 0x183   : > { %v3193_v48 = vadd.f32 %v3053_v10, %v2855_v19  ;;  %v2040_v61 = vpop.f32.mrb[5].mxu0 }
 0x184   : > { %v2308_v23 = vadd.f32 %v2307_v13, %v2277_v29  ;;  %v3194_v37 = vadd.f32 %v2040_v61, %v1133_v43  ;;  %v2240_v30 = vadd.f32 %v3191_v45, %v2239_v20  ;;  %v2858_v0 = vpop.f32.mrb[6].mxu1 }
 0x185   : > { %2211 = vst [vmem:[%s4071_s14 + $0x28] sm:$0xff] %v3193_v48  ;;  %v1147_v11 = vpop.f32.mrb[7].mxu1  ;;  %v2280_v21 = vmul.f32 %v3193_v48, %v3193_v48 }
 0x186   : > { %2210 = vst [vmem:[%s4071_s14 + $0x20] sm:$0xff] %v3194_v37  ;;  %v2241_v60 = vadd.f32 %v3194_v37, %v2240_v30  ;;  %v2279_v38 = vmul.f32 %v3194_v37, %v3194_v37  ;;  %v2309_v24 = vadd.f32 %v2308_v23, %v2278_v49  ;;  %v3056_v28 = vpop.f32.mrb[6].mxu0 }
 0x187   : > { %v3195_v15 = vadd.f32 %v3056_v28, %v2858_v0  ;;  %v2052_v18 = vpop.f32.mrb[7].mxu0 }
 0x188   : > { %v2310_v22 = vadd.f32 %v2309_v24, %v2279_v38  ;;  %v3196_v25 = vadd.f32 %v2052_v18, %v1147_v11  ;;  %v2242_v32 = vadd.f32 %v3193_v48, %v2241_v60  ;;  %v2861_v36 = vpop.f32.mrb[8].mxu1 }
 0x189   : > { %2213 = vst [vmem:[%s4071_s14 + $0x38] sm:$0xff] %v3195_v15  ;;  %v1161_v4 = vpop.f32.mrb[9].mxu1  ;;  %v2282_v26 = vmul.f32 %v3195_v15, %v3195_v15 }
 0x18a   : > { %2212 = vst [vmem:[%s4071_s14 + $0x30] sm:$0xff] %v3196_v25  ;;  %v2243_v1 = vadd.f32 %v3196_v25, %v2242_v32  ;;  %v2281_v59 = vmul.f32 %v3196_v25, %v3196_v25  ;;  %v2311_v41 = vadd.f32 %v2310_v22, %v2280_v21  ;;  %v3059_v53 = vpop.f32.mrb[8].mxu0 }
 0x18b   : > { %v3197_v14 = vadd.f32 %v3059_v53, %v2861_v36  ;;  %v2064_v9 = vpop.f32.mrb[9].mxu0 }
 0x18c   : > { %v2312_v31 = vadd.f32 %v2311_v41, %v2281_v59  ;;  %v3198_v2 = vadd.f32 %v2064_v9, %v1161_v4  ;;  %v2244_v50 = vadd.f32 %v3195_v15, %v2243_v1  ;;  %v2864_v51 = vpop.f32.mrb[10].mxu1 }
 0x18d   : > { %2215 = vst [vmem:[%s4071_s14 + $0x48] sm:$0xff] %v3197_v14  ;;  %v1175_v8 = vpop.f32.mrb[11].mxu1  ;;  %v2284_v27 = vmul.f32 %v3197_v14, %v3197_v14 }
 0x18e   : > { %2214 = vst [vmem:[%s4071_s14 + $0x40] sm:$0xff] %v3198_v2  ;;  %v2245_v57 = vadd.f32 %v3198_v2, %v2244_v50  ;;  %v2283_v58 = vmul.f32 %v3198_v2, %v3198_v2  ;;  %v2313_v62 = vadd.f32 %v2312_v31, %v2282_v26  ;;  %v3062_v3 = vpop.f32.mrb[10].mxu0 }
 0x18f   : > { %v3199_v33 = vadd.f32 %v3062_v3, %v2864_v51  ;;  %v2076_v16 = vpop.f32.mrb[11].mxu0 }
 0x190   : > { %v2314_v6 = vadd.f32 %v2313_v62, %v2283_v58  ;;  %v3200_v54 = vadd.f32 %v2076_v16, %v1175_v8  ;;  %v2246_v55 = vadd.f32 %v3197_v14, %v2245_v57  ;;  %v2867_v63 = vpop.f32.mrb[12].mxu1 }
 0x191   : > { %2217 = vst [vmem:[%s4071_s14 + $0x58] sm:$0xff] %v3199_v33  ;;  %v1189_v5 = vpop.f32.mrb[13].mxu1  ;;  %v2286_v7 = vmul.f32 %v3199_v33, %v3199_v33 }
 0x192   : > { %2216 = vst [vmem:[%s4071_s14 + $0x50] sm:$0xff] %v3200_v54  ;;  %v2247_v52 = vadd.f32 %v3200_v54, %v2246_v55  ;;  %v2285_v34 = vmul.f32 %v3200_v54, %v3200_v54  ;;  %v2315_v12 = vadd.f32 %v2314_v6, %v2284_v27  ;;  %v3065_v44 = vpop.f32.mrb[12].mxu0 }
 0x193   : > { %v3201_v47 = vadd.f32 %v3065_v44, %v2867_v63  ;;  %v2088_v42 = vpop.f32.mrb[13].mxu0 }
 0x194   : > { %v2316_v46 = vadd.f32 %v2315_v12, %v2285_v34  ;;  %v3202_v35 = vadd.f32 %v2088_v42, %v1189_v5  ;;  %v2248_v56 = vadd.f32 %v3199_v33, %v2247_v52  ;;  %v2870_v39 = vpop.f32.mrb[14].mxu1 }
 0x195   : > { %2219 = vst [vmem:[%s4071_s14 + $0x68] sm:$0xff] %v3201_v47  ;;  %v1203_v19 = vpop.f32.mrb[15].mxu1  ;;  %v2288_v10 = vmul.f32 %v3201_v47, %v3201_v47 }
 0x196   : > { %2218 = vst [vmem:[%s4071_s14 + $0x60] sm:$0xff] %v3202_v35  ;;  %v2249_v45 = vadd.f32 %v3202_v35, %v2248_v56  ;;  %v2287_v17 = vmul.f32 %v3202_v35, %v3202_v35  ;;  %v2317_v13 = vadd.f32 %v2316_v46, %v2286_v7  ;;  %v3068_v40 = vpop.f32.mrb[14].mxu0 }
 0x197   : > { %v3203_v20 = vadd.f32 %v3068_v40, %v2870_v39  ;;  %v2100_v29 = vpop.f32.mrb[15].mxu0 }
 0x198   : > { %v2318_v43 = vadd.f32 %v2317_v13, %v2287_v17  ;;  %v3204_v48 = vadd.f32 %v2100_v29, %v1203_v19  ;;  %v2250_v61 = vadd.f32 %v3201_v47, %v2249_v45  ;;  %v2873_v49 = vpop.f32.mrb[16].mxu1 }
 0x199   : > { %2221 = vst [vmem:[%s4071_s14 + $0x78] sm:$0xff] %v3203_v20  ;;  %v1217_v60 = vpop.f32.mrb[17].mxu1  ;;  %v2290_v28 = vmul.f32 %v3203_v20, %v3203_v20 }
 0x19a   : > { %2220 = vst [vmem:[%s4071_s14 + $0x70] sm:$0xff] %v3204_v48  ;;  %v2251_v23 = vadd.f32 %v3204_v48, %v2250_v61  ;;  %v2289_v37 = vmul.f32 %v3204_v48, %v3204_v48  ;;  %v2319_v30 = vadd.f32 %v2318_v43, %v2288_v10  ;;  %v3071_v0 = vpop.f32.mrb[16].mxu0 }
 0x19b   : > { %v3205_v38 = vadd.f32 %v3071_v0, %v2873_v49  ;;  %v2112_v24 = vpop.f32.mrb[17].mxu0 }
 0x19c   : > { %v2320_v11 = vadd.f32 %v2319_v30, %v2289_v37  ;;  %v3206_v15 = vadd.f32 %v2112_v24, %v1217_v60  ;;  %v2252_v18 = vadd.f32 %v3203_v20, %v2251_v23  ;;  %v2876_v21 = vpop.f32.mrb[18].mxu1 }
 0x19d   : > { %2223 = vst [vmem:[%s4071_s14 + $0x88] sm:$0xff] %v3205_v38  ;;  %v1231_v1 = vpop.f32.mrb[19].mxu1  ;;  %v2292_v53 = vmul.f32 %v3205_v38, %v3205_v38 }
 0x19e   : > { %2222 = vst [vmem:[%s4071_s14 + $0x80] sm:$0xff] %v3206_v15  ;;  %v2253_v22 = vadd.f32 %v3206_v15, %v2252_v18  ;;  %v2291_v25 = vmul.f32 %v3206_v15, %v3206_v15  ;;  %v2321_v32 = vadd.f32 %v2320_v11, %v2290_v28  ;;  %v3074_v36 = vpop.f32.mrb[18].mxu0 }
 0x19f   : > { %v3207_v59 = vadd.f32 %v3074_v36, %v2876_v21  ;;  %v2124_v41 = vpop.f32.mrb[19].mxu0 }
 0x1a0   : > { %v2322_v4 = vadd.f32 %v2321_v32, %v2291_v25  ;;  %v3208_v14 = vadd.f32 %v2124_v41, %v1231_v1  ;;  %v2254_v9 = vadd.f32 %v3205_v38, %v2253_v22  ;;  %v2879_v26 = vpop.f32.mrb[20].mxu1 }
 0x1a1   : > { %2225 = vst [vmem:[%s4071_s14 + $0x98] sm:$0xff] %v3207_v59  ;;  %v1245_v57 = vpop.f32.mrb[21].mxu1  ;;  %v2294_v3 = vmul.f32 %v3207_v59, %v3207_v59 }
 0x1a2   : > { %2224 = vst [vmem:[%s4071_s14 + $0x90] sm:$0xff] %v3208_v14  ;;  %v2255_v31 = vadd.f32 %v3208_v14, %v2254_v9  ;;  %v2293_v2 = vmul.f32 %v3208_v14, %v3208_v14  ;;  %v2323_v50 = vadd.f32 %v2322_v4, %v2292_v53  ;;  %v3077_v51 = vpop.f32.mrb[20].mxu0 }
 0x1a3   : > { %v3209_v58 = vadd.f32 %v3077_v51, %v2879_v26  ;;  %v2136_v62 = vpop.f32.mrb[21].mxu0 }
 0x1a4   : > { %v2324_v8 = vadd.f32 %v2323_v50, %v2293_v2  ;;  %v3210_v33 = vadd.f32 %v2136_v62, %v1245_v57  ;;  %v2256_v16 = vadd.f32 %v3207_v59, %v2255_v31  ;;  %v2882_v27 = vpop.f32.mrb[22].mxu1 }
 0x1a5   : > { %2227 = vst [vmem:[%s4071_s14 + $0xa8] sm:$0xff] %v3209_v58  ;;  %v1259_v52 = vpop.f32.mrb[23].mxu1  ;;  %v2296_v44 = vmul.f32 %v3209_v58, %v3209_v58 }
 0x1a6   : > { %2226 = vst [vmem:[%s4071_s14 + $0xa0] sm:$0xff] %v3210_v33  ;;  %v2257_v6 = vadd.f32 %v3210_v33, %v2256_v16  ;;  %v2295_v54 = vmul.f32 %v3210_v33, %v3210_v33  ;;  %v2325_v55 = vadd.f32 %v2324_v8, %v2294_v3  ;;  %v3080_v63 = vpop.f32.mrb[22].mxu0 }
 0x1a7   : > { %v3211_v34 = vadd.f32 %v3080_v63, %v2882_v27  ;;  %v2148_v12 = vpop.f32.mrb[23].mxu0 }
 0x1a8   : > { %v2326_v5 = vadd.f32 %v2325_v55, %v2295_v54  ;;  %v3212_v47 = vadd.f32 %v2148_v12, %v1259_v52  ;;  %v2258_v42 = vadd.f32 %v3209_v58, %v2257_v6  ;;  %v2885_v7 = vpop.f32.mrb[24].mxu1 }
 0x1a9   : > { %2229 = vst [vmem:[%s4071_s14 + $0xb8] sm:$0xff] %v3211_v34  ;;  %v1273_v45 = vpop.f32.mrb[25].mxu1  ;;  %v2298_v40 = vmul.f32 %v3211_v34, %v3211_v34 }
 0x1aa   : > { %2228 = vst [vmem:[%s4071_s14 + $0xb0] sm:$0xff] %v3212_v47  ;;  %v2259_v46 = vadd.f32 %v3212_v47, %v2258_v42  ;;  %v2297_v35 = vmul.f32 %v3212_v47, %v3212_v47  ;;  %v2327_v56 = vadd.f32 %v2326_v5, %v2296_v44  ;;  %v3083_v39 = vpop.f32.mrb[24].mxu0 }
 0x1ab   : > { %v3213_v17 = vadd.f32 %v3083_v39, %v2885_v7  ;;  %v2160_v13 = vpop.f32.mrb[25].mxu0 }
 0x1ac   : > { %v2328_v19 = vadd.f32 %v2327_v56, %v2297_v35  ;;  %v3214_v20 = vadd.f32 %v2160_v13, %v1273_v45  ;;  %v2260_v29 = vadd.f32 %v3211_v34, %v2259_v46  ;;  %v2888_v10 = vpop.f32.mrb[26].mxu1  ;;  %v2344_v34 = vlaneseq }
 0x1ad   : > { %2231 = vst [vmem:[%s4071_s14 + $0xc8] sm:$0xff] %v3213_v17  ;;  %v1287_v23 = vpop.f32.mrb[27].mxu1  ;;  %v2300_v0 = vmul.f32 %v3213_v17, %v3213_v17 }
 0x1ae   : > { %2230 = vst [vmem:[%s4071_s14 + $0xc0] sm:$0xff] %v3214_v20  ;;  %v2261_v43 = vadd.f32 %v3214_v20, %v2260_v29  ;;  %v2299_v48 = vmul.f32 %v3214_v20, %v3214_v20  ;;  %v2329_v61 = vadd.f32 %v2328_v19, %v2298_v40  ;;  %v3086_v49 = vpop.f32.mrb[26].mxu0  ;;  %v2345_v42 = vshrl.u32 %v2344_v34, 7 }
 0x1af   : > { %v3215_v37 = vadd.f32 %v3086_v49, %v2888_v10  ;;  %v2172_v30 = vpop.f32.mrb[27].mxu0 }
 0x1b0   : > { %v2330_v60 = vadd.f32 %v2329_v61, %v2299_v48  ;;  %v3216_v38 = vadd.f32 %v2172_v30, %v1287_v23  ;;  %v2262_v24 = vadd.f32 %v3213_v17, %v2261_v43  ;;  %v2891_v28 = vpop.f32.mrb[28].mxu1  ;;  %vm2346_vm1 = vcmp.eq.s32.totalorder %v2345_v42, 0 }
 0x1b1   : > { %2233 = vst [vmem:[%s4071_s14 + $0xd8] sm:$0xff] %v3215_v37  ;;  %v1301_v22 = vpop.f32.mrb[29].mxu1  ;;  %v2302_v36 = vmul.f32 %v3215_v37, %v3215_v37  ;;  %vm2348_vm2 = vcmp.eq.s32.totalorder %v2345_v42, 1 }
 0x1b2   : > { %2232 = vst [vmem:[%s4071_s14 + $0xd0] sm:$0xff] %v3216_v38  ;;  %v2263_v11 = vadd.f32 %v3216_v38, %v2262_v24  ;;  %v2301_v15 = vmul.f32 %v3216_v38, %v3216_v38  ;;  %v2331_v18 = vadd.f32 %v2330_v60, %v2300_v0  ;;  %v3089_v21 = vpop.f32.mrb[28].mxu0 }
 0x1b3   : > { %v3217_v25 = vadd.f32 %v3089_v21, %v2891_v28  ;;  %v2184_v32 = vpop.f32.mrb[29].mxu0 }
 0x1b4   : > { %v2332_v1 = vadd.f32 %v2331_v18, %v2301_v15  ;;  %v3218_v59 = vadd.f32 %v2184_v32, %v1301_v22  ;;  %v2264_v41 = vadd.f32 %v3215_v37, %v2263_v11  ;;  %v2894_v53 = vpop.f32.mrb[30].mxu1 }
 0x1b5   : > { %2235 = vst [vmem:[%s4071_s14 + $0xe8] sm:$0xff] %v3217_v25  ;;  %v1315_v31 = vpop.f32.mrb[31].mxu1  ;;  %v2304_v51 = vmul.f32 %v3217_v25, %v3217_v25 }
 0x1b6   : > { %2234 = vst [vmem:[%s4071_s14 + $0xe0] sm:$0xff] %v3218_v59  ;;  %v2265_v4 = vadd.f32 %v3218_v59, %v2264_v41  ;;  %v2303_v14 = vmul.f32 %v3218_v59, %v3218_v59  ;;  %v2333_v9 = vadd.f32 %v2332_v1, %v2302_v36  ;;  %v3092_v26 = vpop.f32.mrb[30].mxu0 }
 0x1b7   : > { %v3219_v2 = vadd.f32 %v3092_v26, %v2894_v53  ;;  %v2196_v50 = vpop.f32.mrb[31].mxu0 }
 0x1b8   : > { %v2334_v57 = vadd.f32 %v2333_v9, %v2303_v14  ;;  %v3220_v58 = vadd.f32 %v2196_v50, %v1315_v31  ;;  %v2266_v62 = vadd.f32 %v3217_v25, %v2265_v4 }
 0x1b9   : > { %2237 = vst [vmem:[%s4071_s14 + $0xf8] sm:$0xff] %v3219_v2  ;;  %v2306_v16 = vmul.f32 %v3219_v2, %v3219_v2 }
 0x1ba   : > { %2236 = vst [vmem:[%s4071_s14 + $0xf0] sm:$0xff] %v3220_v58  ;;  %v2267_v3 = vadd.f32 %v3220_v58, %v2266_v62  ;;  %v2305_v8 = vmul.f32 %v3220_v58, %v3220_v58  ;;  %v2335_v33 = vadd.f32 %v2334_v57, %v2304_v51 }
 0x1bc   : > { %v2268_v27 = vadd.f32 %v3219_v2, %v2267_v3  ;;  %v2336_v6 = vadd.f32 %v2335_v33, %v2305_v8 }
 0x1be   : > { %v2269_v54 = vrot.slane %v2268_v27, 4  ;;  %v2337_v55 = vadd.f32 %v2336_v6, %v2306_v16 }
 0x1c0   : > { %v2270_v63 = vadd.f32 %v2269_v54, %v2268_v27  ;;  %v2338_v52 = vrot.slane %v2337_v55, 4 }
 0x1c2   : > { %v2271_v12 = vrot.slane %v2270_v63, 2  ;;  %v2339_v44 = vadd.f32 %v2338_v52, %v2337_v55 }
 0x1c4   : > { %v2272_v5 = vadd.f32 %v2271_v12, %v2270_v63  ;;  %v2340_v47 = vrot.slane %v2339_v44, 2 }
 0x1c6   : > { %v2273_v7 = vrot.slane %v2272_v5, 1  ;;  %v2341_v46 = vadd.f32 %v2340_v47, %v2339_v44 }
 0x1c8   : > { %v2274_v35 = vadd.f32 %v2273_v7, %v2272_v5  ;;  %v2342_v56 = vrot.slane %v2341_v46, 1 }
 0x1ca   : > { %v2343_v39 = vadd.f32 %v2342_v56, %v2341_v46  ;;  %v2347_v45 = vsel %vm2346_vm1, %v2274_v35, 0.0 }
 0x1cc   : > { %v2349_v17 = vsel %vm2348_vm2, %v2343_v39, 0.0 }
 0x1cd   : > { %v2350_v13 = vadd.f32 %v2349_v17, %v2347_v45 }
 0x1cf   : > { %2351 = vst [vmem:[%s184_s18] sm:$0xff] %v2350_v13 }
 0x1d0 PF: > { %s14_s12 = sadd.s32 1, %s3363_s12  }
 0x1d1   : > { %p11_p5 = scmp.ge.s32.totalorder %s14_s12, 4  }
 0x1d3   :  { %13 = sbr.rel (!%p11_p5) target bundleno = 1 (0x1), region = 70 }

</bundles_post_ra>
